<compile_context>
chip_gen: v5e
topology: v5e:2x2
jax: 0.10.0
libtpu: 0.0.40
codegen_flags: <defaults>
</compile_context>

<pallas_src>
import jax
import jax.numpy as jnp
from jax.experimental import pallas as pl
from jax.experimental.pallas import tpu as pltpu


def transpose_kernel(x_ref, o_ref):
    # x_ref block: (1, T1, T2); o_ref block: (1, T2, T1).
    # Indexing [0] gives a 2-D slice, so .T is a true 2-D transpose (XLU).
    o_ref[0] = x_ref[0].T


def _pick_tile(dim: int, pref: int) -> int:
    """Largest 128-multiple tile <= pref that divides `dim`; else the full dim.

    A full-extent block is always legal (it equals the array dim), just not
    lane-dense; 128-multiples keep both input and output blocks aligned to the
    (8, 128) / packed-dtype tiling and give unmasked vector stores.
    """
    if dim % 128 != 0:
        return dim
    t = min(pref, dim)
    t -= t % 128
    while dim % t != 0:
        t -= 128
    return t


def transpose_1_2(x, tile: int = 256):
    """Pallas equivalent of torch.Tensor.transpose(1, 2) on a 3-D tensor."""
    B, D1, D2 = x.shape
    t1 = _pick_tile(D1, tile)
    t2 = _pick_tile(D2, tile)
    grid = (B, D1 // t1, D2 // t2)

    itemsize = jnp.dtype(x.dtype).itemsize
    cost = pl.CostEstimate(
        flops=0,
        transcendentals=0,
        bytes_accessed=2 * B * D1 * D2 * itemsize,  # one read + one write
    )

    return pl.pallas_call(
        transpose_kernel,
        out_shape=jax.ShapeDtypeStruct((B, D2, D1), x.dtype),
        grid_spec=pltpu.PrefetchScalarGridSpec(
            num_scalar_prefetch=0,
            grid=grid,
            # Input tile (b, i, j) of the (B, D1, D2) array ...
            in_specs=[pl.BlockSpec((1, t1, t2), lambda b, i, j: (b, i, j))],
            # ... lands at tile (b, j, i) of the (B, D2, D1) output.
            out_specs=pl.BlockSpec((1, t2, t1), lambda b, i, j: (b, j, i)),
        ),
        compiler_params=pltpu.CompilerParams(
            # Every tile is independent: shard all axes across TCs (v7x megacore).
            dimension_semantics=("parallel", "parallel", "parallel"),
            # Tiles are ~256 KiB each; 32 MiB leaves ample headroom even on
            # v7x's 64 MiB physical VMEM.
            vmem_limit_bytes=32 * 1024 * 1024,
        ),
        cost_estimate=cost,
    )(x)


if __name__ == "__main__":
    key = jax.random.PRNGKey(0)

    # Primary shape: exercises the tiled, lane-dense path (dims are 128-multiples).
    x = jax.random.normal(key, (2, 256, 512), dtype=jnp.float32)
    out = jax.block_until_ready(transpose_1_2(x))
    ref = jnp.transpose(x, (0, 2, 1))
    assert out.shape == ref.shape, (out.shape, ref.shape)
    assert jnp.array_equal(out, ref), "mismatch vs reference transpose (tiled path)"

    # Small / non-128-aligned shape: exercises the full-extent-block fallback.
    x2 = jax.random.normal(jax.random.PRNGKey(0), (2, 8, 128), dtype=jnp.float32)
    out2 = jax.block_until_ready(transpose_1_2(x2))
    ref2 = jnp.transpose(x2, (0, 2, 1))
    assert out2.shape == ref2.shape, (out2.shape, ref2.shape)
    assert jnp.array_equal(out2, ref2), "mismatch vs reference transpose (fallback path)"

    print("KERNEL_OK")
</pallas_src>

<mosaic_0001>
module attributes {stable_mosaic.version = 11 : i64} {
  func.func @transpose_kernel(%arg0: i32, %arg1: i32, %arg2: i32, %arg3: memref<1x256x256xf32, #tpu.memory_space<vmem>>, %arg4: memref<1x256x256xf32, #tpu.memory_space<vmem>>) attributes {dimension_semantics = [#tpu.dimension_semantics<parallel>, #tpu.dimension_semantics<parallel>, #tpu.dimension_semantics<parallel>], iteration_bounds = array<i64: 2, 1, 2>, scalar_prefetch = 0 : i64, scratch_operands = 0 : i64, tpu.core_type = #tpu.core_type<tc>, window_params = [{transform_indices = @transform_0, window_bounds = array<i64: 1, 256, 256>}, {transform_indices = @transform_1, window_bounds = array<i64: 1, 256, 256>}]} {
    %c0 = arith.constant 0 : index
    %c0_0 = arith.constant 0 : index
    %c0_1 = arith.constant 0 : index
    %0 = vector.load %arg3[%c0, %c0_0, %c0_1] : memref<1x256x256xf32, #tpu.memory_space<vmem>>, vector<1x256x256xf32>
    %1 = vector.shape_cast %0 : vector<1x256x256xf32> to vector<256x256xf32>
    %2 = tpu.transpose %1, [1, 0] : vector<256x256xf32> -> vector<256x256xf32>
    %c0_2 = arith.constant 0 : index
    %c0_3 = arith.constant 0 : index
    %c0_4 = arith.constant 0 : index
    %3 = vector.load %arg4[%c0_2, %c0_3, %c0_4] : memref<1x256x256xf32, #tpu.memory_space<vmem>>, vector<1x256x256xf32>
    %4 = vector.shape_cast %3 : vector<1x256x256xf32> to vector<256x256xf32>
    %5 = vector.shape_cast %2 : vector<256x256xf32> to vector<1x256x256xf32>
    tpu.vector_store %arg4[%c0_2, %c0_3, %c0_4], %5 {strides = array<i32>} : memref<1x256x256xf32, #tpu.memory_space<vmem>>, vector<1x256x256xf32>,
    return
  }
  func.func @transform_0(%arg0: i32, %arg1: i32, %arg2: i32) -> (i32, i32, i32) {
    %c0_i32 = arith.constant 0 : i32
    return %arg0, %arg1, %arg2 : i32, i32, i32
  }
  func.func @transform_1(%arg0: i32, %arg1: i32, %arg2: i32) -> (i32, i32, i32) {
    %c0_i32 = arith.constant 0 : i32
    return %arg0, %arg2, %arg1 : i32, i32, i32
  }
}

</mosaic_0001>

<bundles_post_ra>
// kernel: tpu_custom_call.1
= control target key start
LH: loop header
LB: loop body
LE: loop exit
PB: predicated region body
PF: predicated region fallthrough
CT: control target
= control target key end

     0   :  { %6 = vsyncpa [#allocation3], 0  ;;  %s1073_s0 = inlined_call_operand.hbm [shape: f32[2,256,512], index: 0, kind: input, shape index: {}]   ;;  %s1074_s1 = inlined_call_operand.hbm [shape: f32[2,512,256], index: 1, kind: output, shape index: {}]  }
   0x1   :  { %8 = vsyncpa [#allocation3 + $0x1], 0 }
   0x2   :  { %9 = vsyncpa [#allocation4], 0 }
   0x3   :  { %11 = vsyncpa [#allocation4 + $0x1], 0  ;;  %s794_s6 = smov 0   ;;  %s796_s7 = smov 0  }
   0x4   :  { %s798_s8 = smov 0   ;;  %s800_s9 = smov 0  }
   0x5   :  { %s802_s10 = smov 0   ;;  %s804_s11 = smov 0  }
   0x6   :  { %s806_s12 = smov 0   ;;  %s808_s13 = smov 0  }
   0x7 LB: > { %s547_s14 = sadd.s32 4294967295, %s777_s13   ;;  %s548_s15 = sadd.s32 4294967294, %s777_s13   ;;  %s777_s13 = sphi %s808_s13, %s17_s13   ;;  %s773_s12 = sphi %s806_s12, %s1091_s12   ;;  %s769_s11 = sphi %s804_s11, %s1090_s11   ;;  %s765_s10 = sphi %s802_s10, %s1089_s10   ;;  %s761_s9 = sphi %s800_s9, %s1088_s9   ;;  %s757_s8 = sphi %s798_s8, %s1087_s8   ;;  %s753_s7 = sphi %s796_s7, %s1086_s7   ;;  %s749_s6 = sphi %s794_s6, %s1085_s6  }
   0x8   : > { %s29_s16 = sadd.s32 1, %s769_s11  ;;  %s36_s17 = sadd.s32 1, %s773_s12 }
   0x9   : > { %p30_p0 = scmp.ge.s32.totalorder %s29_s16, 2  ;;  %s47_s18 = sadd.s32 1, %s757_s8 }
   0xa   : > { %p54_p1 = scmp.ne.s32.totalorder %s757_s8, %s753_s7  ;;  %p55_p2 = scmp.eq.s32.totalorder %s777_s13, 0 }
   0xb   : > { %s1093_s16 = smov (%p30_p0, %s29_s16), 0  ;;  %s1095_s17 = smov (!%p30_p0, %s36_s17), %s773_s12 }
   0xc   : > { %1077 = sst [smem:[#allocation8_spill]] %s1093_s16  ;;  %s43_s19 = ssub.s32 %s769_s11, %s1093_s16 }
   0xd   : > { %p847_p3 = por %p55_p2, %p54_p1  ;;  %p38_p4 = scmp.ge.s32.totalorder %s1095_s17, 2 }
   0xe   : > { %p60_p5 = scmp.ne.s32.totalorder %s753_s7, %s749_s6  ;;  %p61_p6 = scmp.eq.s32.totalorder %s547_s14, 0 }
   0xf   : > { %p88_p7 = scmp.eq.s32.totalorder %s547_s14, 3  ;;  %s1097_s17 = smov (%p38_p4, %s1095_s17), 0 }
  0x10   : > { %1079 = sst [smem:[#allocation9_spill]] %s1097_s17  ;;  %p855_p8 = por %p61_p6, %p60_p5 }
  0x11   : > { %p859_p9 = por %p88_p7, %p54_p1  ;;  %s40_s23 = ssub.s32 %s773_s12, %s1097_s17 }
  0x12   : > { %p94_p10 = scmp.eq.s32.totalorder %s548_s15, 3  ;;  %s44_s24 = sor.u32 %s43_s19, %s40_s23 }
  0x13   : > { %p45_p11 = scmp.eq.s32.totalorder %s44_s24, 0  ;;  %p578_p13 = scmp.lt.s32.totalorder %s777_s13, 4 }
  0x14   : > { %p865_p12 = por %p94_p10, %p60_p5  ;;  %s114_s26 = sand.u32 1, %s757_s8  }
  0x15   : > { %s872_s27 = scalar_select %p45_p11, %s757_s8, %s47_s18  }
  0x16   : > { %s551_s28 = sshll.u32 %s114_s26, 9  ;;  %s552_s29 = sshll.u32 %s769_s11, 1 }
  0x17   : > { %s553_s30 = sshll.u32 %s773_s12, 7  ;;  %s118_s2 = scalar_lea.vmem [#allocation2], %s551_s28 }
  0x18   : > { %s131_s3 = sshll.u32 %s118_s2, 4  ;;  %s126_s4 = sadd.s32 %s553_s30, %s552_s29  ;;  %s132_s3 = int_to_ptr.vmem [resolvable:$true] %s131_s3 }
  0x19   : > { %s554_s5 = sshll.u32 %s126_s4, 3  ;;  %p571_p0 = pnand %p578_p13, %p847_p3 }
  0x1a   : > { %s128_s19 = scalar_lea.hbm %s1073_s0, %s554_s5  ;;  %p555_p1 = scmp.ge.s32.totalorder %s777_s13, 1 }
  0x1b   : > { %s129_s23 = sshll.u32 %s128_s19, 4  ;;  %s115_s18 = scalar_lea.sflag [#allocation3], %s114_s26  ;;  %s130_s23 = int_to_ptr.hbm [resolvable:$true] %s129_s23 }
  0x1c   : > { %s779_s24 = smov 512   ;;  %s780_s17 = smov 256  }
  0x1d   : > { %s781_s16 = smov 16   ;;  %p139_p2 = scmp.lt.s32.totalorder %s777_s13, 5 }
  0x1e   : > { %573 = dma.hbm_to_vmem [thread:$0]  (!%p571_p0), %s130_s23, 8192, %s132_s3, %s115_s18, %s779_s24, %s780_s17, %s781_s16  }
  0x1f   : > { %p140_p4 = pnand %p555_p1, %p139_p2 }
  0x20   : > { %s884_s28 = sand.u32 (!%p140_p4), 1, %s753_s7  }
  0x21   : > { %143 = sbr.rel (%p140_p4) target bundleno = 457 (0x1c9), region = 24  ;;  %s556_s20 = sshll.u32 (!%p140_p4), %s884_s28, 9 }
  0x22   : > { %s146_s29 = scalar_lea.sflag (!%p140_p4), [#allocation3], %s884_s28  ;;  %s890_s30 = scalar_lea.vmem (!%p140_p4), [#allocation2], %s556_s20 }
  0x26   : > { %740 = dma.done.wait (%p855_p8), %s146_s29, 8192  }
  0x27   : > { %742 = vsyncadd (%p855_p8), %s146_s29, 4294959104  ;;  %v173_v0 = vld [vmem:[%s890_s30] sm:$0xff]  ;;  %v175_v1 = vld [vmem:[%s890_s30 + $0x10] sm:$0xff]  ;;  %s936_s16 = scalar_lea.vmem [#allocation5], %s556_s20  ;;  %s565_s17 = sshll.u32 %s761_s9, 6 }
  0x28   : > { %237 = vxpose.xlu0.b32.start [1/16] %v173_v0, 128  ;;  %v177_v2 = vld [vmem:[%s890_s30 + $0x20] sm:$0xff]  ;;  %v179_v3 = vld [vmem:[%s890_s30 + $0x30] sm:$0xff]  ;;  %v174_v12 = vld [vmem:[%s890_s30 + $0x8] sm:$0xff]  ;;  %s561_s21 = sshll.u32 %s765_s10, 7  ;;  %s447_s14 = sshll.u32 %s936_s16, 4  ;;  %s448_s14 = int_to_ptr.vmem [resolvable:$true] %s447_s14 }
  0x29   : > { %v181_v4 = vld [vmem:[%s890_s30 + $0x40] sm:$0xff]  ;;  %v183_v5 = vld [vmem:[%s890_s30 + $0x50] sm:$0xff]  ;;  %269 = vxpose.xlu1.b32.start [1/16] %v174_v12, 128  ;;  %v176_v14 = vld [vmem:[%s890_s30 + $0x18] sm:$0xff]  ;;  %s444_s26 = sadd.s32 %s565_s17, %s561_s21  ;;  %s430_s19 = scalar_lea.sflag [#allocation4], %s884_s28 }
  0x2a   : > { %v185_v6 = vld [vmem:[%s890_s30 + $0x60] sm:$0xff]  ;;  %v187_v7 = vld [vmem:[%s890_s30 + $0x70] sm:$0xff]  ;;  %v178_v17 = vld [vmem:[%s890_s30 + $0x28] sm:$0xff]  ;;  %s562_s2 = sshll.u32 %s444_s26, 3  ;;  %s699_s24 = scalar_lea.hbm %s1074_s1, 2048 }
  0x2b   : > { %v189_v8 = vld [vmem:[%s890_s30 + $0x80] sm:$0xff]  ;;  %v191_v9 = vld [vmem:[%s890_s30 + $0x90] sm:$0xff]  ;;  %v180_v20 = vld [vmem:[%s890_s30 + $0x38] sm:$0xff]  ;;  %s446_s5 = scalar_lea.hbm %s1074_s1, %s562_s2 }
  0x2c   : > { %v193_v10 = vld [vmem:[%s890_s30 + $0xa0] sm:$0xff]  ;;  %v195_v11 = vld [vmem:[%s890_s30 + $0xb0] sm:$0xff]  ;;  %v182_v23 = vld [vmem:[%s890_s30 + $0x48] sm:$0xff]  ;;  %s449_s15 = sshll.u32 %s446_s5, 4  ;;  %s450_s15 = int_to_ptr.hbm [resolvable:$true] %s449_s15 }
  0x2d   : > { %v197_v13 = vld [vmem:[%s890_s30 + $0xc0] sm:$0xff]  ;;  %v199_v15 = vld [vmem:[%s890_s30 + $0xd0] sm:$0xff]  ;;  %v206_v24 = vld [vmem:[%s890_s30 + $0x108] sm:$0xff]  ;;  %s693_s9 = sshra.s32 %s450_s15, 4  ;;  %s694_s9 = int_to_ptr.hbm [resolvable:$true] %s693_s9 }
  0x2e   : > { %v205_v16 = vld [vmem:[%s890_s30 + $0x100] sm:$0xff]  ;;  %v207_v19 = vld [vmem:[%s890_s30 + $0x110] sm:$0xff]  ;;  %v208_v26 = vld [vmem:[%s890_s30 + $0x118] sm:$0xff]  ;;  %s695_s10 = scalar_lea.hbm %s694_s9, 512  ;;  %p700_p7 = scmp.lt.s32.totalorder %s694_s9, %s1074_s1 }
  0x2f   : > { %301 = vxpose.xlu2.b32.start [1/16] %v205_v16, 128  ;;  %v201_v18 = vld [vmem:[%s890_s30 + $0xe0] sm:$0xff]  ;;  %v203_v21 = vld [vmem:[%s890_s30 + $0xf0] sm:$0xff]  ;;  %v184_v27 = vld [vmem:[%s890_s30 + $0x58] sm:$0xff]  ;;  %p696_p3 = scmp.ne.s32.totalorder %s694_s9, %s695_s10  ;;  %p701_p8 = scmp.lt.s32.totalorder %s699_s24, %s695_s10 }
  0x30   : > { %238 = vxpose.xlu0.b32.cont [2/16] %v175_v1, 128  ;;  %v209_v22 = vld [vmem:[%s890_s30 + $0x120] sm:$0xff]  ;;  %v211_v25 = vld [vmem:[%s890_s30 + $0x130] sm:$0xff]  ;;  %v210_v29 = vld [vmem:[%s890_s30 + $0x128] sm:$0xff] }
  0x31   : > { %270 = vxpose.xlu1.b32.cont [2/16] %v176_v14, 128  ;;  %v213_v28 = vld [vmem:[%s890_s30 + $0x140] sm:$0xff]  ;;  %v186_v30 = vld [vmem:[%s890_s30 + $0x68] sm:$0xff]  ;;  %v215_v31 = vld [vmem:[%s890_s30 + $0x150] sm:$0xff]  ;;  %p697_p5 = pnand %p696_p3, %p859_p9  ;;  %p702_p10 = por %p701_p8, %p700_p7 }
  0x32   : > { %v212_v32 = vld [vmem:[%s890_s30 + $0x138] sm:$0xff]  ;;  %v217_v34 = vld [vmem:[%s890_s30 + $0x160] sm:$0xff]  ;;  %v214_v35 = vld [vmem:[%s890_s30 + $0x148] sm:$0xff] }
  0x33   : > { %v188_v33 = vld [vmem:[%s890_s30 + $0x78] sm:$0xff]  ;;  %v190_v36 = vld [vmem:[%s890_s30 + $0x88] sm:$0xff]  ;;  %v219_v37 = vld [vmem:[%s890_s30 + $0x170] sm:$0xff]  ;;  %p698_p6 = pneg %p697_p5 }
  0x34   : > { %v216_v39 = vld [vmem:[%s890_s30 + $0x158] sm:$0xff]  ;;  %v221_v41 = vld [vmem:[%s890_s30 + $0x180] sm:$0xff]  ;;  %v218_v43 = vld [vmem:[%s890_s30 + $0x168] sm:$0xff] }
  0x35   : > { %v192_v40 = vld [vmem:[%s890_s30 + $0x98] sm:$0xff]  ;;  %v194_v44 = vld [vmem:[%s890_s30 + $0xa8] sm:$0xff]  ;;  %v223_v45 = vld [vmem:[%s890_s30 + $0x190] sm:$0xff]  ;;  %p703_p11 = pnand %p702_p10, %p698_p6 }
  0x36   : > { %v220_v47 = vld [vmem:[%s890_s30 + $0x178] sm:$0xff]  ;;  %v225_v49 = vld [vmem:[%s890_s30 + $0x1a0] sm:$0xff]  ;;  %v222_v51 = vld [vmem:[%s890_s30 + $0x188] sm:$0xff] }
  0x37   : > { %302 = vxpose.xlu2.b32.cont [2/16] %v207_v19, 128  ;;  %v196_v48 = vld [vmem:[%s890_s30 + $0xb8] sm:$0xff]  ;;  %v198_v52 = vld [vmem:[%s890_s30 + $0xc8] sm:$0xff]  ;;  %v227_v53 = vld [vmem:[%s890_s30 + $0x1b0] sm:$0xff] }
  0x38   : > { %239 = vxpose.xlu0.b32.cont [3/16] %v177_v2, 128  ;;  %v224_v55 = vld [vmem:[%s890_s30 + $0x198] sm:$0xff]  ;;  %v229_v57 = vld [vmem:[%s890_s30 + $0x1c0] sm:$0xff]  ;;  %v226_v59 = vld [vmem:[%s890_s30 + $0x1a8] sm:$0xff] }
  0x39   : > { %271 = vxpose.xlu1.b32.cont [3/16] %v178_v17, 128  ;;  %v200_v56 = vld [vmem:[%s890_s30 + $0xd8] sm:$0xff]  ;;  %v202_v60 = vld [vmem:[%s890_s30 + $0xe8] sm:$0xff]  ;;  %v231_v61 = vld [vmem:[%s890_s30 + $0x1d0] sm:$0xff] }
  0x3a   : > { %v228_v63 = vld [vmem:[%s890_s30 + $0x1b8] sm:$0xff]  ;;  %v233_v1 = vld [vmem:[%s890_s30 + $0x1e0] sm:$0xff] }
  0x3b   : > { %v204_v0 = vld [vmem:[%s890_s30 + $0xf8] sm:$0xff] }
  0x3f   : > { %303 = vxpose.xlu2.b32.cont [3/16] %v209_v22, 128 }
  0x40   : > { %240 = vxpose.xlu0.b32.cont [4/16] %v179_v3, 128  ;;  %v230_v3 = vld [vmem:[%s890_s30 + $0x1c8] sm:$0xff] }
  0x41   : > { %272 = vxpose.xlu1.b32.cont [4/16] %v180_v20, 128 }
  0x47   : > { %304 = vxpose.xlu2.b32.cont [4/16] %v211_v25, 128 }
  0x48   : > { %241 = vxpose.xlu0.b32.cont [5/16] %v181_v4, 128  ;;  %v235_v4 = vld [vmem:[%s890_s30 + $0x1f0] sm:$0xff] }
  0x49   : > { %273 = vxpose.xlu1.b32.cont [5/16] %v182_v23, 128 }
  0x4f   : > { %305 = vxpose.xlu2.b32.cont [5/16] %v213_v28, 128 }
  0x50   : > { %242 = vxpose.xlu0.b32.cont [6/16] %v183_v5, 128 }
  0x51   : > { %274 = vxpose.xlu1.b32.cont [6/16] %v184_v27, 128 }
  0x57   : > { %306 = vxpose.xlu2.b32.cont [6/16] %v215_v31, 128 }
  0x58   : > { %243 = vxpose.xlu0.b32.cont [7/16] %v185_v6, 128  ;;  %v232_v6 = vld [vmem:[%s890_s30 + $0x1d8] sm:$0xff] }
  0x59   : > { %275 = vxpose.xlu1.b32.cont [7/16] %v186_v30, 128 }
  0x5f   : > { %307 = vxpose.xlu2.b32.cont [7/16] %v217_v34, 128 }
  0x60   : > { %244 = vxpose.xlu0.b32.cont [8/16] %v187_v7, 128 }
  0x61   : > { %276 = vxpose.xlu1.b32.cont [8/16] %v188_v33, 128 }
  0x67   : > { %308 = vxpose.xlu2.b32.cont [8/16] %v219_v37, 128 }
  0x68   : > { %245 = vxpose.xlu0.b32.cont [9/16] %v189_v8, 128  ;;  %v234_v8 = vld [vmem:[%s890_s30 + $0x1e8] sm:$0xff] }
  0x69   : > { %277 = vxpose.xlu1.b32.cont [9/16] %v190_v36, 128 }
  0x6f   : > { %309 = vxpose.xlu2.b32.cont [9/16] %v221_v41, 128 }
  0x70   : > { %246 = vxpose.xlu0.b32.cont [10/16] %v191_v9, 128 }
  0x71   : > { %278 = vxpose.xlu1.b32.cont [10/16] %v192_v40, 128 }
  0x77   : > { %310 = vxpose.xlu2.b32.cont [10/16] %v223_v45, 128 }
  0x78   : > { %247 = vxpose.xlu0.b32.cont [11/16] %v193_v10, 128  ;;  %v236_v10 = vld [vmem:[%s890_s30 + $0x1f8] sm:$0xff] }
  0x79   : > { %279 = vxpose.xlu1.b32.cont [11/16] %v194_v44, 128 }
  0x7f   : > { %311 = vxpose.xlu2.b32.cont [11/16] %v225_v49, 128 }
  0x80   : > { %248 = vxpose.xlu0.b32.cont [12/16] %v195_v11, 128 }
  0x81   : > { %280 = vxpose.xlu1.b32.cont [12/16] %v196_v48, 128 }
  0x87   : > { %312 = vxpose.xlu2.b32.cont [12/16] %v227_v53, 128 }
  0x88   : > { %249 = vxpose.xlu0.b32.cont [13/16] %v197_v13, 128 }
  0x89   : > { %281 = vxpose.xlu1.b32.cont [13/16] %v198_v52, 128 }
  0x8f   : > { %313 = vxpose.xlu2.b32.cont [13/16] %v229_v57, 128 }
  0x90   : > { %250 = vxpose.xlu0.b32.cont [14/16] %v199_v15, 128 }
  0x91   : > { %282 = vxpose.xlu1.b32.cont [14/16] %v200_v56, 128 }
  0x97   : > { %314 = vxpose.xlu2.b32.cont [14/16] %v231_v61, 128 }
  0x98   : > { %251 = vxpose.xlu0.b32.cont [15/16] %v201_v18, 128 }
  0x99   : > { %283 = vxpose.xlu1.b32.cont [15/16] %v202_v60, 128 }
  0x9f   : > { %315 = vxpose.xlu2.b32.cont [15/16] %v233_v1, 128 }
  0xa0   : > { %252 = vxpose.xlu0.b32.end [16/16] %v203_v21, 128 }
  0xa1   : > { %284 = vxpose.xlu1.b32.end [16/16] %v204_v0, 128 }
  0xa7   : > { %316 = vxpose.xlu2.b32.end [16/16] %v235_v4, 128 }
  0xa8   : > { %333 = vxpose.xlu0.b32.start [1/16] %v206_v24, 128 }
  0xb0   : > { %334 = vxpose.xlu0.b32.cont [2/16] %v208_v26, 128 }
  0xb8   : > { %335 = vxpose.xlu0.b32.cont [3/16] %v210_v29, 128 }
  0xc0   : > { %336 = vxpose.xlu0.b32.cont [4/16] %v212_v32, 128 }
  0xc8   : > { %337 = vxpose.xlu0.b32.cont [5/16] %v214_v35, 128  ;;  %v317_v12 = vpop.trf.xlu2 }
  0xc9   : > { %366 = vst [vmem:[%s936_s16 + $0x8] sm:$0xff] %v317_v12 }
  0xcc   : > { %v253_v38 = vpop.trf.xlu0 }
  0xcd   : > { %365 = vst [vmem:[%s936_s16] sm:$0xff] %v253_v38  ;;  %v285_v13 = vpop.trf.xlu1 }
  0xce   : > { %397 = vst [vmem:[%s936_s16 + $0x100] sm:$0xff] %v285_v13 }
  0xd0   : > { %338 = vxpose.xlu0.b32.cont [6/16] %v216_v39, 128  ;;  %v318_v15 = vpop.trf.xlu2 }
  0xd1   : > { %368 = vst [vmem:[%s936_s16 + $0x18] sm:$0xff] %v318_v15 }
  0xd4   : > { %v254_v42 = vpop.trf.xlu0 }
  0xd5   : > { %367 = vst [vmem:[%s936_s16 + $0x10] sm:$0xff] %v254_v42  ;;  %v286_v16 = vpop.trf.xlu1 }
  0xd6   : > { %399 = vst [vmem:[%s936_s16 + $0x110] sm:$0xff] %v286_v16 }
  0xd8   : > { %339 = vxpose.xlu0.b32.cont [7/16] %v218_v43, 128  ;;  %v319_v18 = vpop.trf.xlu2 }
  0xd9   : > { %370 = vst [vmem:[%s936_s16 + $0x28] sm:$0xff] %v319_v18 }
  0xdc   : > { %v255_v46 = vpop.trf.xlu0 }
  0xdd   : > { %369 = vst [vmem:[%s936_s16 + $0x20] sm:$0xff] %v255_v46  ;;  %v287_v19 = vpop.trf.xlu1 }
  0xde   : > { %401 = vst [vmem:[%s936_s16 + $0x120] sm:$0xff] %v287_v19 }
  0xe0   : > { %340 = vxpose.xlu0.b32.cont [8/16] %v220_v47, 128  ;;  %v320_v21 = vpop.trf.xlu2 }
  0xe1   : > { %372 = vst [vmem:[%s936_s16 + $0x38] sm:$0xff] %v320_v21 }
  0xe4   : > { %v256_v50 = vpop.trf.xlu0 }
  0xe5   : > { %371 = vst [vmem:[%s936_s16 + $0x30] sm:$0xff] %v256_v50  ;;  %v288_v22 = vpop.trf.xlu1 }
  0xe6   : > { %403 = vst [vmem:[%s936_s16 + $0x130] sm:$0xff] %v288_v22 }
  0xe8   : > { %341 = vxpose.xlu0.b32.cont [9/16] %v222_v51, 128  ;;  %v321_v24 = vpop.trf.xlu2 }
  0xe9   : > { %374 = vst [vmem:[%s936_s16 + $0x48] sm:$0xff] %v321_v24 }
  0xec   : > { %v257_v54 = vpop.trf.xlu0 }
  0xed   : > { %373 = vst [vmem:[%s936_s16 + $0x40] sm:$0xff] %v257_v54  ;;  %v289_v25 = vpop.trf.xlu1 }
  0xee   : > { %405 = vst [vmem:[%s936_s16 + $0x140] sm:$0xff] %v289_v25 }
  0xf0   : > { %342 = vxpose.xlu0.b32.cont [10/16] %v224_v55, 128  ;;  %v322_v27 = vpop.trf.xlu2 }
  0xf1   : > { %376 = vst [vmem:[%s936_s16 + $0x58] sm:$0xff] %v322_v27 }
  0xf4   : > { %v258_v58 = vpop.trf.xlu0 }
  0xf5   : > { %375 = vst [vmem:[%s936_s16 + $0x50] sm:$0xff] %v258_v58  ;;  %v290_v28 = vpop.trf.xlu1 }
  0xf6   : > { %407 = vst [vmem:[%s936_s16 + $0x150] sm:$0xff] %v290_v28 }
  0xf8   : > { %343 = vxpose.xlu0.b32.cont [11/16] %v226_v59, 128  ;;  %v323_v30 = vpop.trf.xlu2 }
  0xf9   : > { %378 = vst [vmem:[%s936_s16 + $0x68] sm:$0xff] %v323_v30 }
  0xfc   : > { %v259_v62 = vpop.trf.xlu0 }
  0xfd   : > { %377 = vst [vmem:[%s936_s16 + $0x60] sm:$0xff] %v259_v62  ;;  %v291_v31 = vpop.trf.xlu1 }
  0xfe   : > { %409 = vst [vmem:[%s936_s16 + $0x160] sm:$0xff] %v291_v31 }
 0x100   : > { %344 = vxpose.xlu0.b32.cont [12/16] %v228_v63, 128  ;;  %v324_v33 = vpop.trf.xlu2 }
 0x101   : > { %380 = vst [vmem:[%s936_s16 + $0x78] sm:$0xff] %v324_v33 }
 0x104   : > { %v260_v2 = vpop.trf.xlu0 }
 0x105   : > { %379 = vst [vmem:[%s936_s16 + $0x70] sm:$0xff] %v260_v2  ;;  %v292_v34 = vpop.trf.xlu1 }
 0x106   : > { %411 = vst [vmem:[%s936_s16 + $0x170] sm:$0xff] %v292_v34 }
 0x108   : > { %345 = vxpose.xlu0.b32.cont [13/16] %v230_v3, 128  ;;  %v325_v36 = vpop.trf.xlu2 }
 0x109   : > { %382 = vst [vmem:[%s936_s16 + $0x88] sm:$0xff] %v325_v36 }
 0x10c   : > { %v261_v5 = vpop.trf.xlu0 }
 0x10d   : > { %381 = vst [vmem:[%s936_s16 + $0x80] sm:$0xff] %v261_v5  ;;  %v293_v37 = vpop.trf.xlu1 }
 0x10e   : > { %413 = vst [vmem:[%s936_s16 + $0x180] sm:$0xff] %v293_v37 }
 0x110   : > { %346 = vxpose.xlu0.b32.cont [14/16] %v232_v6, 128  ;;  %v326_v39 = vpop.trf.xlu2 }
 0x111   : > { %384 = vst [vmem:[%s936_s16 + $0x98] sm:$0xff] %v326_v39 }
 0x114   : > { %v262_v7 = vpop.trf.xlu0 }
 0x115   : > { %383 = vst [vmem:[%s936_s16 + $0x90] sm:$0xff] %v262_v7  ;;  %v294_v40 = vpop.trf.xlu1 }
 0x116   : > { %415 = vst [vmem:[%s936_s16 + $0x190] sm:$0xff] %v294_v40 }
 0x118   : > { %347 = vxpose.xlu0.b32.cont [15/16] %v234_v8, 128  ;;  %v327_v42 = vpop.trf.xlu2 }
 0x119   : > { %386 = vst [vmem:[%s936_s16 + $0xa8] sm:$0xff] %v327_v42 }
 0x11c   : > { %v263_v9 = vpop.trf.xlu0 }
 0x11d   : > { %385 = vst [vmem:[%s936_s16 + $0xa0] sm:$0xff] %v263_v9  ;;  %v295_v43 = vpop.trf.xlu1 }
 0x11e   : > { %417 = vst [vmem:[%s936_s16 + $0x1a0] sm:$0xff] %v295_v43 }
 0x120   : > { %348 = vxpose.xlu0.b32.end [16/16] %v236_v10, 128  ;;  %v328_v45 = vpop.trf.xlu2 }
 0x121   : > { %388 = vst [vmem:[%s936_s16 + $0xb8] sm:$0xff] %v328_v45 }
 0x124   : > { %v264_v11 = vpop.trf.xlu0 }
 0x125   : > { %387 = vst [vmem:[%s936_s16 + $0xb0] sm:$0xff] %v264_v11  ;;  %v296_v46 = vpop.trf.xlu1 }
 0x126   : > { %419 = vst [vmem:[%s936_s16 + $0x1b0] sm:$0xff] %v296_v46 }
 0x128   : > { %v329_v48 = vpop.trf.xlu2 }
 0x129   : > { %390 = vst [vmem:[%s936_s16 + $0xc8] sm:$0xff] %v329_v48 }
 0x12c   : > { %v265_v14 = vpop.trf.xlu0 }
 0x12d   : > { %389 = vst [vmem:[%s936_s16 + $0xc0] sm:$0xff] %v265_v14  ;;  %v297_v49 = vpop.trf.xlu1 }
 0x12e   : > { %421 = vst [vmem:[%s936_s16 + $0x1c0] sm:$0xff] %v297_v49 }
 0x130   : > { %v330_v51 = vpop.trf.xlu2 }
 0x131   : > { %392 = vst [vmem:[%s936_s16 + $0xd8] sm:$0xff] %v330_v51 }
 0x134   : > { %v266_v17 = vpop.trf.xlu0 }
 0x135   : > { %391 = vst [vmem:[%s936_s16 + $0xd0] sm:$0xff] %v266_v17  ;;  %v298_v52 = vpop.trf.xlu1 }
 0x136   : > { %423 = vst [vmem:[%s936_s16 + $0x1d0] sm:$0xff] %v298_v52 }
 0x138   : > { %v331_v54 = vpop.trf.xlu2 }
 0x139   : > { %394 = vst [vmem:[%s936_s16 + $0xe8] sm:$0xff] %v331_v54 }
 0x13c   : > { %v267_v20 = vpop.trf.xlu0 }
 0x13d   : > { %393 = vst [vmem:[%s936_s16 + $0xe0] sm:$0xff] %v267_v20  ;;  %v299_v55 = vpop.trf.xlu1 }
 0x13e   : > { %425 = vst [vmem:[%s936_s16 + $0x1e0] sm:$0xff] %v299_v55 }
 0x140   : > { %v332_v57 = vpop.trf.xlu2 }
 0x141   : > { %396 = vst [vmem:[%s936_s16 + $0xf8] sm:$0xff] %v332_v57 }
 0x144   : > { %v268_v23 = vpop.trf.xlu0 }
 0x145   : > { %395 = vst [vmem:[%s936_s16 + $0xf0] sm:$0xff] %v268_v23  ;;  %v300_v58 = vpop.trf.xlu1 }
 0x146   : > { %427 = vst [vmem:[%s936_s16 + $0x1f0] sm:$0xff] %v300_v58 }
 0x14c   : > { %v349_v26 = vpop.trf.xlu0 }
 0x14d   : > { %398 = vst [vmem:[%s936_s16 + $0x108] sm:$0xff] %v349_v26 }
 0x154   : > { %v350_v29 = vpop.trf.xlu0 }
 0x155   : > { %400 = vst [vmem:[%s936_s16 + $0x118] sm:$0xff] %v350_v29 }
 0x15c   : > { %v351_v32 = vpop.trf.xlu0 }
 0x15d   : > { %402 = vst [vmem:[%s936_s16 + $0x128] sm:$0xff] %v351_v32 }
 0x164   : > { %v352_v35 = vpop.trf.xlu0 }
 0x165   : > { %404 = vst [vmem:[%s936_s16 + $0x138] sm:$0xff] %v352_v35 }
 0x16c   : > { %v353_v38 = vpop.trf.xlu0 }
 0x16d   : > { %406 = vst [vmem:[%s936_s16 + $0x148] sm:$0xff] %v353_v38 }
 0x174   : > { %v354_v41 = vpop.trf.xlu0 }
 0x175   : > { %408 = vst [vmem:[%s936_s16 + $0x158] sm:$0xff] %v354_v41 }
 0x17c   : > { %v355_v44 = vpop.trf.xlu0 }
 0x17d   : > { %410 = vst [vmem:[%s936_s16 + $0x168] sm:$0xff] %v355_v44 }
 0x184   : > { %v356_v47 = vpop.trf.xlu0 }
 0x185   : > { %412 = vst [vmem:[%s936_s16 + $0x178] sm:$0xff] %v356_v47 }
 0x18c   : > { %v357_v50 = vpop.trf.xlu0 }
 0x18d   : > { %414 = vst [vmem:[%s936_s16 + $0x188] sm:$0xff] %v357_v50 }
 0x194   : > { %v358_v53 = vpop.trf.xlu0 }
 0x195   : > { %416 = vst [vmem:[%s936_s16 + $0x198] sm:$0xff] %v358_v53 }
 0x19c   : > { %v359_v56 = vpop.trf.xlu0 }
 0x19d   : > { %418 = vst [vmem:[%s936_s16 + $0x1a8] sm:$0xff] %v359_v56 }
 0x1a4   : > { %v360_v59 = vpop.trf.xlu0 }
 0x1a5   : > { %420 = vst [vmem:[%s936_s16 + $0x1b8] sm:$0xff] %v360_v59 }
 0x1ac   : > { %v361_v60 = vpop.trf.xlu0 }
 0x1ad   : > { %422 = vst [vmem:[%s936_s16 + $0x1c8] sm:$0xff] %v361_v60 }
 0x1b4   : > { %v362_v61 = vpop.trf.xlu0 }
 0x1b5   : > { %424 = vst [vmem:[%s936_s16 + $0x1d8] sm:$0xff] %v362_v61 }
 0x1bc   : > { %v363_v62 = vpop.trf.xlu0 }
 0x1bd   : > { %426 = vst [vmem:[%s936_s16 + $0x1e8] sm:$0xff] %v363_v62 }
 0x1c4   : > { %v364_v63 = vpop.trf.xlu0 }
 0x1c5   : > { %428 = vst [vmem:[%s936_s16 + $0x1f8] sm:$0xff] %v364_v63 }
 0x1c6   : > { %706 = shalt.err (!%p703_p11)
}
 0x1c7   : > { %s782_s28 = smov 256   ;;  %s783_s30 = smov 16  }
 0x1c8   : > { %568 = dma.vmem_to_hbm [thread:$0]  (%p859_p9), %s448_s14, 8192, %s450_s15, %s430_s19, %s782_s28, %s782_s28, %s783_s30  }
 0x1c9 PF: > { %p579_p13 = scmp.ge.s32.totalorder %s777_s13, 2  ;;  %s464_s16 = sand.u32 1, %s749_s6  }
 0x1ca   : > { %s465_s17 = scalar_lea.sflag [#allocation4], %s464_s16 }
 0x1cb   : > { %p575_p0 = pnand %p579_p13, %p865_p12 }
 0x1cd   : > { %p576_p1 = pneg %p575_p0 }
 0x1cf   : > { %744 = dma.done.wait (%p576_p1), %s465_s17, 8192  }
 0x1d0   : > { %746 = vsyncadd (%p576_p1), %s465_s17, 4294959104  ;;  %s17_s13 = sadd.s32 1, %s777_s13   ;;  %s1083_s22 = sld [smem:[#allocation8_spill]] }
 0x1d1   : > { %p14_p2 = scmp.ge.s32.totalorder %s17_s13, 6   ;;  %s1084_s21 = sld [smem:[#allocation9_spill]] }
 0x1d2   : > { %s1085_s6 = smov %s753_s7  ;;  %s1086_s7 = smov %s757_s8 }
 0x1d3   : > { %s1087_s8 = smov %s872_s27  ;;  %s1088_s9 = smov %s769_s11 }
 0x1d4   : > { %s1089_s10 = smov %s773_s12  ;;  %16 = sbr.rel (!%p14_p2) target bundleno = 7 (0x7), region = 69 }
 0x1d6   : > { %s1090_s11 = smov %s1083_s22 }
 0x1d7   : > { %s1091_s12 = smov %s1084_s21 }
 0x1d9   :  { %471 = vsyncpa [#allocation3], 1 }
 0x1da   :  { %473 = vsyncpa [#allocation3 + $0x1], 1 }
 0x1db   :  { %474 = vsyncpa [#allocation4], 1 }
 0x1dc   :  { %476 = vsyncpa [#allocation4 + $0x1], 1 }

</bundles_post_ra>
